<compile_context>
chip_gen: v7x
topology: tpu7x:2x2x1
jax: 0.10.0
libtpu: 0.0.40
codegen_flags: <defaults>
</compile_context>

<pallas_src>
import jax
import jax.numpy as jnp
from jax.experimental import pallas as pl
from jax.experimental.pallas import tpu as pltpu

LEAKY_SLOPE = 0.2  # GDD's act('LeakyReLU') == nn.LeakyReLU(0.2)
BN_EPS = 1e-5


def _leaky_relu(v):
    return jnp.where(v >= 0, v, LEAKY_SLOPE * v)


def _round_up(x, m):
    return ((x + m - 1) // m) * m


def _cdiv(a, b):
    return -(-a // b)


def fru_kernel(g_ref, x_ref, w1_ref, b1_ref, w2_ref, b2_ref, out_ref):
    # Tiles are (C, tile_pixels): channels on sublanes, pixels on lanes.
    g = g_ref[...].astype(jnp.float32)
    x = x_ref[...].astype(jnp.float32)

    # SE branch: conv1x1(guide) -> LeakyReLU(0.2) -> Sigmoid (EUP slot).
    se = jnp.dot(w1_ref[...], g, preferred_element_type=jnp.float32) + b1_ref[...]
    se = jax.nn.sigmoid(_leaky_relu(se))

    # Main branch: conv1x1(x) with conv bias + eval-BN folded into (W2', b2').
    dx = jnp.dot(w2_ref[...], x, preferred_element_type=jnp.float32) + b2_ref[...]

    # Gate + activation; lane-dense store.
    out_ref[...] = _leaky_relu(dx * se).astype(out_ref.dtype)


def attention_fru(guide, x, params, *, pixel_tile=4096):
    """guide, x: NCHW arrays of identical shape (N, C, H, W)."""
    N, C, H, W = x.shape
    HW = H * W

    # ---- channel (sublane) padding: C must be a multiple of 8 ----------------
    Cp = _round_up(C, 8)
    if Cp != C:
        cpad = ((0, 0), (0, Cp - C), (0, 0), (0, 0))
        guide = jnp.pad(guide, cpad)
        x = jnp.pad(x, cpad)

    # NCHW -> (N*Cp, H*W) is a free reshape (no transpose, no extra HBM pass).
    g2d = guide.reshape(N * Cp, HW)
    x2d = x.reshape(N * Cp, HW)

    # ---- pixel (lane) tiling: balanced, 128-aligned, minimal padding ---------
    hw128 = _round_up(HW, 128)
    n_tiles = max(1, _cdiv(hw128, pixel_tile))
    tp = _round_up(_cdiv(hw128, n_tiles), 128)
    hw_pad = tp * n_tiles
    if hw_pad != HW:
        ppad = ((0, 0), (0, hw_pad - HW))
        g2d = jnp.pad(g2d, ppad)
        x2d = jnp.pad(x2d, ppad)

    # ---- weights: PyTorch conv weight (C_out, C_in, 1, 1) -> (Cp, Cp) --------
    w1 = params["w1"].reshape(C, C)
    b1 = params["b1"].reshape(C)

    # Fold eval-mode BatchNorm (running stats) and the conv bias into conv_1:
    #   (W2 x + b2) * scale + shift == (scale*W2) x + (b2*scale + shift)
    scale = params["bn_gamma"] / jnp.sqrt(params["bn_var"] + BN_EPS)      # (C,)
    shift = params["bn_beta"] - params["bn_mean"] * scale                  # (C,)
    w2 = params["w2"].reshape(C, C) * scale[:, None]
    b2 = params["b2"] * scale + shift

    if Cp != C:
        w1 = jnp.pad(w1, ((0, Cp - C), (0, Cp - C)))
        w2 = jnp.pad(w2, ((0, Cp - C), (0, Cp - C)))
        b1 = jnp.pad(b1, (0, Cp - C))
        b2 = jnp.pad(b2, (0, Cp - C))
    b1 = b1.reshape(Cp, 1)
    b2 = b2.reshape(Cp, 1)

    grid = (N, n_tiles)

    tile_spec = pl.BlockSpec((Cp, tp), lambda n, j: (n, j))   # per-image channels x pixel tile
    mat_spec = pl.BlockSpec((Cp, Cp), lambda n, j: (0, 0))    # resident weights
    vec_spec = pl.BlockSpec((Cp, 1), lambda n, j: (0, 0))     # per-channel biases

    out2d = pl.pallas_call(
        fru_kernel,
        out_shape=jax.ShapeDtypeStruct((N * Cp, hw_pad), x.dtype),
        grid_spec=pltpu.PrefetchScalarGridSpec(
            num_scalar_prefetch=0,
            grid=grid,
            in_specs=[tile_spec, tile_spec,    # guide, x tiles
                      mat_spec, vec_spec,      # W1, b1
                      mat_spec, vec_spec],     # W2' (BN-folded), b2'
            out_specs=tile_spec,
        ),
        compiler_params=pltpu.CompilerParams(
            dimension_semantics=("parallel", "parallel")),
    )(g2d, x2d, w1, b1, w2, b2)

    out = out2d.reshape(N, Cp, hw_pad)
    if Cp != C or hw_pad != HW:
        out = out[:, :C, :HW]
    return out.reshape(N, C, H, W)


def reference(guide, x, params):
    """Pure-JAX reference of the same forward pass (NCHW, eval-mode BN)."""
    C = x.shape[1]
    w1 = params["w1"].reshape(C, C)
    w2 = params["w2"].reshape(C, C)

    def conv1x1(a, w, b):
        y = jnp.einsum("nchw,oc->nohw", a, w)
        return y + b.reshape(1, C, 1, 1)

    se = conv1x1(guide, w1, params["b1"])
    se = jax.nn.sigmoid(_leaky_relu(se))
    dx = conv1x1(x, w2, params["b2"])
    scale = params["bn_gamma"] / jnp.sqrt(params["bn_var"] + BN_EPS)
    shift = params["bn_beta"] - params["bn_mean"] * scale
    dx = dx * scale.reshape(1, C, 1, 1) + shift.reshape(1, C, 1, 1)
    return _leaky_relu(dx * se)


def make_params(key, C):
    k1, k2, k3, k4 = jax.random.split(key, 4)
    return {
        "w1": 0.1 * jax.random.normal(k1, (C, C, 1, 1), jnp.float32),
        "b1": 0.1 * jax.random.normal(k2, (C,), jnp.float32),
        "w2": 0.1 * jax.random.normal(k3, (C, C, 1, 1), jnp.float32),
        "b2": 0.1 * jax.random.normal(k4, (C,), jnp.float32),
        # BatchNorm2d default init / fresh running stats (eval mode).
        "bn_gamma": jnp.ones((C,), jnp.float32),
        "bn_beta": jnp.zeros((C,), jnp.float32),
        "bn_mean": jnp.zeros((C,), jnp.float32),
        "bn_var": jnp.ones((C,), jnp.float32),
    }


if __name__ == "__main__":
    N, C, H, W = 2, 16, 16, 16  # num_channels_down = 16
    key = jax.random.PRNGKey(0)
    kg, kx, kp = jax.random.split(key, 3)
    guide = jax.random.normal(kg, (N, C, H, W), jnp.float32)
    x = jax.random.normal(kx, (N, C, H, W), jnp.float32)
    params = make_params(kp, C)

    out = attention_fru(guide, x, params)
    out = jax.block_until_ready(out)

    ref = reference(guide, x, params)
    assert out.shape == (N, C, H, W)
    assert jnp.allclose(out, ref, atol=1e-5, rtol=1e-5), "mismatch vs reference"
    print("KERNEL_OK")
</pallas_src>

<mosaic_0001>
module attributes {stable_mosaic.version = 11 : i64} {
  func.func @fru_kernel(%arg0: i32, %arg1: i32, %arg2: memref<16x256xf32, #tpu.memory_space<vmem>>, %arg3: memref<16x256xf32, #tpu.memory_space<vmem>>, %arg4: memref<16x16xf32, #tpu.memory_space<vmem>>, %arg5: memref<16x1xf32, #tpu.memory_space<vmem>>, %arg6: memref<16x16xf32, #tpu.memory_space<vmem>>, %arg7: memref<16x1xf32, #tpu.memory_space<vmem>>, %arg8: memref<16x256xf32, #tpu.memory_space<vmem>>) attributes {dimension_semantics = [#tpu.dimension_semantics<parallel>, #tpu.dimension_semantics<parallel>], iteration_bounds = array<i64: 2, 1>, scalar_prefetch = 0 : i64, scratch_operands = 0 : i64, tpu.core_type = #tpu.core_type<tc>, window_params = [{transform_indices = @transform_0, window_bounds = array<i64: 16, 256>}, {transform_indices = @transform_1, window_bounds = array<i64: 16, 256>}, {pipeline_mode = #tpu.pipeline_mode<synchronous>, transform_indices = @transform_2, window_bounds = array<i64: 16, 16>}, {pipeline_mode = #tpu.pipeline_mode<synchronous>, transform_indices = @transform_3, window_bounds = array<i64: 16, 1>}, {pipeline_mode = #tpu.pipeline_mode<synchronous>, transform_indices = @transform_4, window_bounds = array<i64: 16, 16>}, {pipeline_mode = #tpu.pipeline_mode<synchronous>, transform_indices = @transform_5, window_bounds = array<i64: 16, 1>}, {transform_indices = @transform_6, window_bounds = array<i64: 16, 256>}]} {
    %c0 = arith.constant 0 : index
    %c0_0 = arith.constant 0 : index
    %0 = vector.load %arg2[%c0, %c0_0] : memref<16x256xf32, #tpu.memory_space<vmem>>, vector<16x256xf32>
    %c0_1 = arith.constant 0 : index
    %c0_2 = arith.constant 0 : index
    %1 = vector.load %arg3[%c0_1, %c0_2] : memref<16x256xf32, #tpu.memory_space<vmem>>, vector<16x256xf32>
    %c0_3 = arith.constant 0 : index
    %c0_4 = arith.constant 0 : index
    %2 = vector.load %arg4[%c0_3, %c0_4] : memref<16x16xf32, #tpu.memory_space<vmem>>, vector<16x16xf32>
    %cst = arith.constant dense<0.000000e+00> : vector<16x256xf32>
    %3 = tpu.matmul %2, %0, %cst {dimension_numbers = #tpu.dot_dimension_numbers<[1], [0], [0], [1], [0, 0, 1, 1], [], []>} : vector<16x16xf32>, vector<16x256xf32>, vector<16x256xf32> -> vector<16x256xf32>
    %c0_5 = arith.constant 0 : index
    %c0_6 = arith.constant 0 : index
    %4 = vector.load %arg5[%c0_5, %c0_6] : memref<16x1xf32, #tpu.memory_space<vmem>>, vector<16x1xf32>
    %5 = vector.broadcast %4 : vector<16x1xf32> to vector<16x256xf32>
    %6 = arith.addf %3, %5 : vector<16x256xf32>
    %cst_7 = arith.constant 0.000000e+00 : f32
    %7 = vector.broadcast %cst_7 : f32 to vector<16x256xf32>
    %8 = arith.cmpf oge, %6, %7 : vector<16x256xf32>
    %cst_8 = arith.constant 2.000000e-01 : f32
    %9 = vector.broadcast %cst_8 : f32 to vector<16x256xf32>
    %10 = arith.mulf %9, %6 : vector<16x256xf32>
    %11 = arith.select %8, %6, %10 : vector<16x256xi1>, vector<16x256xf32>
    %12 = arith.negf %11 : vector<16x256xf32>
    %13 = math.exp %12 : vector<16x256xf32>
    %cst_9 = arith.constant 1.000000e+00 : f32
    %14 = vector.broadcast %cst_9 : f32 to vector<16x256xf32>
    %15 = arith.addf %14, %13 : vector<16x256xf32>
    %16 = arith.divf %14, %15 : vector<16x256xf32>
    %c0_10 = arith.constant 0 : index
    %c0_11 = arith.constant 0 : index
    %17 = vector.load %arg6[%c0_10, %c0_11] : memref<16x16xf32, #tpu.memory_space<vmem>>, vector<16x16xf32>
    %cst_12 = arith.constant dense<0.000000e+00> : vector<16x256xf32>
    %18 = tpu.matmul %17, %1, %cst_12 {dimension_numbers = #tpu.dot_dimension_numbers<[1], [0], [0], [1], [0, 0, 1, 1], [], []>} : vector<16x16xf32>, vector<16x256xf32>, vector<16x256xf32> -> vector<16x256xf32>
    %c0_13 = arith.constant 0 : index
    %c0_14 = arith.constant 0 : index
    %19 = vector.load %arg7[%c0_13, %c0_14] : memref<16x1xf32, #tpu.memory_space<vmem>>, vector<16x1xf32>
    %20 = vector.broadcast %19 : vector<16x1xf32> to vector<16x256xf32>
    %21 = arith.addf %18, %20 : vector<16x256xf32>
    %22 = arith.mulf %21, %16 : vector<16x256xf32>
    %cst_15 = arith.constant 0.000000e+00 : f32
    %23 = vector.broadcast %cst_15 : f32 to vector<16x256xf32>
    %24 = arith.cmpf oge, %22, %23 : vector<16x256xf32>
    %cst_16 = arith.constant 2.000000e-01 : f32
    %25 = vector.broadcast %cst_16 : f32 to vector<16x256xf32>
    %26 = arith.mulf %25, %22 : vector<16x256xf32>
    %27 = arith.select %24, %22, %26 : vector<16x256xi1>, vector<16x256xf32>
    %c0_17 = arith.constant 0 : index
    %c0_18 = arith.constant 0 : index
    %28 = vector.load %arg8[%c0_17, %c0_18] : memref<16x256xf32, #tpu.memory_space<vmem>>, vector<16x256xf32>
    tpu.vector_store %arg8[%c0_17, %c0_18], %27 {strides = array<i32>} : memref<16x256xf32, #tpu.memory_space<vmem>>, vector<16x256xf32>,
    return
  }
  func.func @transform_0(%arg0: i32, %arg1: i32) -> (i32, i32) {
    %c0_i32 = arith.constant 0 : i32
    return %arg0, %arg1 : i32, i32
  }
  func.func @transform_1(%arg0: i32, %arg1: i32) -> (i32, i32) {
    %c0_i32 = arith.constant 0 : i32
    return %arg0, %arg1 : i32, i32
  }
  func.func @transform_2(%arg0: i32, %arg1: i32) -> (i32, i32) {
    %c0_i32 = arith.constant 0 : i32
    %c0_i32_0 = arith.constant 0 : i32
    %c0_i32_1 = arith.constant 0 : i32
    return %c0_i32, %c0_i32_0 : i32, i32
  }
  func.func @transform_3(%arg0: i32, %arg1: i32) -> (i32, i32) {
    %c0_i32 = arith.constant 0 : i32
    %c0_i32_0 = arith.constant 0 : i32
    %c0_i32_1 = arith.constant 0 : i32
    return %c0_i32, %c0_i32_0 : i32, i32
  }
  func.func @transform_4(%arg0: i32, %arg1: i32) -> (i32, i32) {
    %c0_i32 = arith.constant 0 : i32
    %c0_i32_0 = arith.constant 0 : i32
    %c0_i32_1 = arith.constant 0 : i32
    return %c0_i32, %c0_i32_0 : i32, i32
  }
  func.func @transform_5(%arg0: i32, %arg1: i32) -> (i32, i32) {
    %c0_i32 = arith.constant 0 : i32
    %c0_i32_0 = arith.constant 0 : i32
    %c0_i32_1 = arith.constant 0 : i32
    return %c0_i32, %c0_i32_0 : i32, i32
  }
  func.func @transform_6(%arg0: i32, %arg1: i32) -> (i32, i32) {
    %c0_i32 = arith.constant 0 : i32
    return %arg0, %arg1 : i32, i32
  }
}

</mosaic_0001>

<bundles_post_ra>
// kernel: tpu_custom_call.1
= control target key start
LH: loop header
LB: loop body
LE: loop exit
PB: predicated region body
PF: predicated region fallthrough
CT: control target
= control target key end

     0   :  { %s1325_s0 = inlined_call_operand.hbm [shape: f32[32,256], index: 0, kind: input, shape index: {}]   ;;  %s1326_s1 = inlined_call_operand.hbm [shape: f32[32,256], index: 1, kind: input, shape index: {}]   ;;  %s1327_s2 = inlined_call_operand.vmem [shape: f32[16,16], index: 2, kind: input, shape index: {}]   ;;  %s1328_s3 = inlined_call_operand.vmem [shape: f32[16,1], index: 3, kind: input, shape index: {}]   ;;  %s1329_s4 = inlined_call_operand.vmem [shape: f32[16,16], index: 4, kind: input, shape index: {}]   ;;  %s1330_s5 = inlined_call_operand.vmem [shape: f32[16,1], index: 5, kind: input, shape index: {}]   ;;  %s1331_s6 = inlined_call_operand.hbm [shape: f32[32,256], index: 6, kind: output, shape index: {}]  }
   0x1   :  { %1337 = sst [smem:[#allocation12_spill]] %s1325_s0 }
   0x2   :  { %11 = vsyncpa [#allocation3], 0 }
   0x3   :  { %13 = vsyncpa [#allocation3 + $0x1], 0 }
   0x4   :  { %14 = vsyncpa [#allocation6], 0 }
   0x5   :  { %16 = vsyncpa [#allocation6 + $0x1], 0 }
   0x6   :  { %17 = vsyncpa [#allocation4], 0 }
   0x7   :  { %19 = vsyncpa [#allocation4 + $0x1], 0  ;;  %s1056_s21 = smov 0   ;;  %s1058_s22 = smov 0  }
   0x8   :  { %s1060_s23 = smov 0   ;;  %s1062_s24 = smov 0  }
   0x9   :  { %s1064_s25 = smov 0   ;;  %s1066_s26 = smov 0  }
   0xa LB: > { %s729_s27 = sadd.s32 4294967295, %s1010_s26   ;;  %s730_s28 = sadd.s32 4294967294, %s1010_s26   ;;  %s1010_s26 = sphi %s1066_s26, %s25_s26   ;;  %s1006_s25 = sphi %s1064_s25, %s1358_s25   ;;  %s1002_s24 = sphi %s1062_s24, %s1357_s24   ;;  %s998_s23 = sphi %s1060_s23, %s1356_s23   ;;  %s994_s22 = sphi %s1058_s22, %s1355_s22   ;;  %s990_s21 = sphi %s1056_s21, %s1354_s21  }
   0xb   : > { %s37_s29 = sadd.s32 1, %s1006_s25  ;;  %s46_s30 = sadd.s32 1, %s998_s23 }
   0xc   : > { %p39_p0 = scmp.ge.s32.totalorder %s37_s29, 2  ;;  %p53_p1 = scmp.ne.s32.totalorder %s998_s23, %s994_s22 }
   0xd   : > { %p54_p2 = scmp.eq.s32.totalorder %s1010_s26, 0  ;;  %p59_p3 = scmp.ne.s32.totalorder %s994_s22, %s990_s21 }
   0xe   : > { %s1360_s29 = smov (%p39_p0, %s37_s29), 0  ;;  %p60_p5 = scmp.eq.s32.totalorder %s729_s27, 0 }
   0xf   : > { %1338 = sst [smem:[#allocation11_spill]] %s1360_s29  ;;  %p1097_p4 = por %p54_p2, %p53_p1 }
  0x10   : > { %s41_s8 = ssub.s32 %s1006_s25, %s1360_s29  ;;  %p197_p6 = scmp.eq.s32.totalorder %s729_s27, 1 }
  0x11   : > { %p44_p7 = scmp.eq.s32.totalorder %s41_s8, 0  ;;  %p1103_p8 = por %p60_p5, %p59_p3 }
  0x12   : > { %p1107_p9 = por %p197_p6, %p53_p1  ;;  %p203_p10 = scmp.eq.s32.totalorder %s730_s28, 1 }
  0x13   : > { %s1340_s9 = scalar_select %p1103_p8, 1, 0 }
  0x14   : > { %s1341_s10 = scalar_select %p1107_p9, 1, 0 }
  0x15   : > { %s1112_s11 = scalar_select %p44_p7, %s998_s23, %s46_s30  }
  0x16   : > { %p1114_p11 = por %p203_p10, %p59_p3  ;;  %p790_p13 = scmp.lt.s32.totalorder %s1010_s26, 2 }
  0x17   : > { %s1121_s13 = sand.u32 1, %s998_s23   ;;  %s760_s15 = sshll.u32 %s1006_s25, 9 }
  0x18   : > { %s1342_s12 = scalar_select %p1114_p11, 1, 0 }
  0x19   : > { %s1332_s14 = sshll.u32 %s1121_s13, 5  ;;  %s1343_s0 = sld [smem:[#allocation12_spill]] }
  0x1a   : > { %s239_s19 = scalar_lea.vmem [#allocation2], %s1332_s14  ;;  %p1138_p0 = pnand %p790_p13, %p1097_p4 }
  0x1b   : > { %s249_s20 = sshll.u32 %s239_s19, 4  ;;  %s236_s28 = scalar_lea.sflag [#allocation3], %s1121_s13  ;;  %s1134_s20 = int_to_ptr.vmem [resolvable:$true] %s249_s20 }
  0x1c   : > { %p866_p3 = pneg %p1138_p0 }
  0x1f   : > { %s1130_s18 = scalar_lea.hbm %s1343_s0, %s760_s15  ;;  %s869_s7 = scalar_lea.hbm %s1343_s0, 1024 }
  0x20   : > { %s864_s30 = scalar_lea.hbm %s1130_s18, 512  ;;  %p870_p4 = scmp.lt.u32.totalorder %s1130_s18, %s1343_s0 }
  0x21   : > { %p865_p2 = scmp.ne.s32.totalorder %s1130_s18, %s864_s30  ;;  %p871_p7 = scmp.lt.u32.totalorder %s869_s7, %s864_s30 }
  0x22   : > { %p873_p13 = scmp.lt.u32.totalorder %s864_s30, %s1130_s18 }
  0x23   : > { %p867_p5 = pnand %p866_p3, %p865_p2  ;;  %p872_p10 = por %p871_p7, %p870_p4 }
  0x25   : > { %p868_p6 = pneg %p867_p5  ;;  %p874_p12 = por %p873_p13, %p872_p10 }
  0x27   : > { %p875_p1 = pnand %p874_p12, %p868_p6 }
  0x29   : > { %878 = shalt.err (!%p875_p1)
}
  0x2a   : > { %s879_s14 = scalar_lea.vmem %s1134_s20, 512  ;;  %s1012_s8 = smov [#allocation2]  }
  0x2b   : > { %p880_p2 = scmp.ne.s32.totalorder %s1134_s20, %s879_s14  ;;  %s884_s16 = sshll.u32 %s1012_s8, 4  ;;  %s885_s16 = int_to_ptr.vmem [resolvable:$false] %s884_s16 }
  0x2c   : > { %s886_s17 = scalar_lea.vmem %s885_s16, 1024  ;;  %p887_p9 = scmp.lt.s32.totalorder %s1134_s20, %s885_s16 }
  0x2d   : > { %p882_p5 = pnand %p880_p2, %p866_p3  ;;  %p888_p4 = scmp.lt.s32.totalorder %s886_s17, %s879_s14 }
  0x2f   : > { %p883_p11 = pneg %p882_p5  ;;  %p889_p7 = por %p888_p4, %p887_p9 }
  0x31   : > { %p890_p10 = pnand %p889_p7, %p883_p11 }
  0x33   : > { %893 = shalt.err (!%p890_p10)
}
  0x34   : > { %s1335_s30 = smov 256   ;;  %s1014_s7 = smov 16  }
  0x35   : > { %782 = dma.hbm_to_vmem [thread:$0]  (!%p1138_p0), %s1130_s18, 512, %s1134_s20, %s236_s28, %s1335_s30, %s1335_s30, %s1014_s7  }
  0x36   : > { %p281_p9 = scmp.lt.s32.totalorder %s1010_s26, 3  ;;  %s1180_s8 = scalar_lea.hbm %s1326_s1, %s760_s15 }
  0x37   : > { %p1345_p11 = scmp.ge.s32.totalorder %s1010_s26, 1  ;;  %s1347_s17 = sshll.u32 %s1121_s13, 5 }
  0x38   : > { %s263_s0 = scalar_lea.vmem [#allocation5], %s1347_s17  ;;  %s260_s18 = scalar_lea.sflag [#allocation6], %s1121_s13 }
  0x39   : > { %p1184_p12 = pnand %p1345_p11, %p281_p9  ;;  %s273_s29 = sshll.u32 %s263_s0, 4  ;;  %s1190_s29 = int_to_ptr.vmem [resolvable:$true] %s273_s29 }
  0x3a   : > { %s894_s20 = scalar_lea.hbm %s1180_s8, 512  ;;  %s899_s14 = scalar_lea.hbm %s1326_s1, 1024 }
  0x3b   : > { %p895_p1 = scmp.ne.s32.totalorder %s1180_s8, %s894_s20  ;;  %p900_p2 = scmp.lt.u32.totalorder %s1180_s8, %s1326_s1 }
  0x3c   : > { %p901_p5 = scmp.lt.u32.totalorder %s899_s14, %s894_s20  ;;  %p903_p7 = scmp.lt.u32.totalorder %s894_s20, %s1180_s8 }
  0x3d   : > { %p897_p6 = pnand %p895_p1, %p866_p3 }
  0x3e   : > { %p902_p4 = por %p901_p5, %p900_p2 }
  0x3f   : > { %p898_p13 = pneg %p897_p6 }
  0x40   : > { %p904_p10 = por %p903_p7, %p902_p4 }
  0x42   : > { %p905_p9 = pnand %p904_p10, %p898_p13 }
  0x44   : > { %908 = shalt.err (!%p905_p9)
}
  0x45   : > { %s909_s0 = scalar_lea.vmem %s1190_s29, 512  ;;  %s1015_s17 = smov [#allocation5]  }
  0x46   : > { %p910_p11 = scmp.ne.s32.totalorder %s1190_s29, %s909_s0  ;;  %s914_s15 = sshll.u32 %s1015_s17, 4  ;;  %s915_s15 = int_to_ptr.vmem [resolvable:$false] %s914_s15 }
  0x47   : > { %s916_s30 = scalar_lea.vmem %s915_s15, 1024  ;;  %p917_p8 = scmp.lt.s32.totalorder %s1190_s29, %s915_s15 }
  0x48   : > { %p912_p1 = pnand %p910_p11, %p866_p3  ;;  %p918_p2 = scmp.lt.s32.totalorder %s916_s30, %s909_s0 }
  0x4a   : > { %p913_p6 = pneg %p912_p1  ;;  %p919_p5 = por %p918_p2, %p917_p8 }
  0x4c   : > { %p920_p4 = pnand %p919_p5, %p913_p6 }
  0x4e   : > { %923 = shalt.err (!%p920_p4)
}
  0x4f   : > { %s1348_s20 = smov 256   ;;  %285 = sbr.rel (%p1184_p12) target bundleno = 364 (0x16c), region = 44 }
  0x50   : > { %785 = dma.hbm_to_vmem [thread:$0]  (!%p1138_p0), %s1180_s8, 512, %s1190_s29, %s260_s18, %s1348_s20, %s1348_s20, %s1014_s7  }
  0x51   : > { %s1224_s28 = sand.u32 (!%p1184_p12), 1, %s994_s22   ;;  %p1349_p8 = scmp.ne.s32.totalorder (!%p1184_p12), %s1340_s9, 0 }
  0x52   : > { %s1227_s14 = sshll.u32 (!%p1184_p12), %s1224_s28, 5  ;;  %s288_s27 = scalar_lea.sflag (!%p1184_p12), [#allocation3], %s1224_s28 }
  0x53   : > { %s291_s19 = scalar_lea.vmem (!%p1184_p12), [#allocation2], %s1227_s14 }
  0x56   : > { %977 = dma.done.wait (%p1349_p8), %s288_s27, 512  }
  0x57   : > { %979 = vsyncadd (%p1349_p8), %s288_s27, 4294966784  ;;  %s297_s29 = scalar_lea.sflag [#allocation6], %s1224_s28  ;;  %s300_s13 = scalar_lea.vmem [#allocation5], %s1227_s14 }
  0x58   : > { %981 = dma.done.wait (%p1349_p8), %s297_s29, 512  }
  0x59   : > { %983 = vsyncadd (%p1349_p8), %s297_s29, 4294966784  ;;  %v1016_v0 = vmov 0.0   ;;  %v1017_v1 = vmov 0   ;;  %v341_v2 = vld [vmem:[%s291_s19 + $0x8] sm:$0xff]  ;;  %v343_v3 = vld [vmem:[%s291_s19 + $0x18] sm:$0xff]  ;;  %vm362_vm0 = vcmask 130048  }
  0x5a   : > { %433 = vmatprep.mubr.f32.mxu0 %v1016_v0  ;;  %566 = vmatprep.mubr.f32.mxu1 %v1016_v0  ;;  %v340_v4 = vld [vmem:[%s291_s19] sm:$0xff]  ;;  %v765_v5 = vpack.c.bf16 %v343_v3, %v341_v2  ;;  %v342_v6 = vld [vmem:[%s291_s19 + $0x10] sm:$0xff]  ;;  %v345_v8 = vld [vmem:[%s300_s13 + $0x8] sm:$0xff]  ;;  %s333_s8 = scalar_lea.vmem [#allocation7], %s1227_s14  ;;  %s764_s18 = sshll.u32 %s1002_s24, 9 }
  0x5b   : > { %846 = vset.pattern.permute.xlu0 %v1017_v1  ;;  %847 = vset.pattern.permute.xlu1 %v1017_v1  ;;  %v767_v7 = vpack.c.bf16 %v342_v6, %v340_v4  ;;  %v347_v9 = vld [vmem:[%s300_s13 + $0x18] sm:$0xff]  ;;  %v344_v10 = vld [vmem:[%s300_s13] sm:$0xff]  ;;  %v346_v12 = vld [vmem:[%s300_s13 + $0x10] sm:$0xff]  ;;  %s616_s16 = sshll.u32 %s333_s8, 4  ;;  %s1276_s17 = scalar_lea.hbm %s1331_s6, %s764_s18  ;;  %s1271_s16 = int_to_ptr.vmem [resolvable:$true] %s616_s16 }
  0x5c   : > { %766 = vmatprep.subr.bf16.mxu0 %v765_v5  ;;  %v769_v11 = vpack.c.bf16 %v347_v9, %v345_v8  ;;  %v348_v13 = vld [vmem:[%s1327_s2] sm:$0xff]  ;;  %v771_v14 = vpack.c.bf16 %v346_v12, %v344_v10  ;;  %v351_v18 = vld [vmem:[%s1328_s3 + $0x8] sm:$0xff]  ;;  %s600_s24 = scalar_lea.sflag [#allocation4], %s1224_s28  ;;  %s924_s15 = scalar_lea.vmem %s1271_s16, 512 }
  0x5d   : > { %768 = vmatpush1.bf16.msra.mxu0 %v767_v7  ;;  %v350_v15 = vld [vmem:[%s1328_s3] sm:$0xff]  ;;  %v485_v19 = vld [vmem:[%s1330_s5 + $0x8] sm:$0xff]  ;;  %p925_p0 = scmp.ne.s32.totalorder %s1271_s16, %s924_s15  ;;  %p1350_p3 = scmp.ne.s32.totalorder %s1341_s10, 0 }
  0x5e   : > { %v484_v16 = vld [vmem:[%s1330_s5] sm:$0xff]  ;;  %770 = vmatprep.subr.bf16.mxu1 %v769_v11  ;;  %354 = vperm.xlu0 %846, %v350_v15   ;;  %v349_v20 = vld [vmem:[%s1327_s2 + $0x8] sm:$0xff]  ;;  %s1018_s30 = smov [#allocation7]  }
  0x5f   : > { %772 = vmatpush1.bf16.msra.mxu1 %v771_v14  ;;  %v482_v17 = vld [vmem:[%s1329_s4] sm:$0xff]  ;;  %488 = vperm.xlu1 %847, %v484_v16   ;;  %v483_v21 = vld [vmem:[%s1329_s4 + $0x8] sm:$0xff]  ;;  %p926_p12 = pnand %p925_p0, %p1350_p3  ;;  %s928_s20 = sshll.u32 %s1018_s30, 4  ;;  %s929_s20 = int_to_ptr.vmem [resolvable:$false] %s928_s20 }
  0x60   : > { %745 = vmatmul.mubr.msk.f32.vlgmr.msra.gmra.mrb[0].mxu0 %vm362_vm0, %v348_v13  ;;  %s930_s27 = scalar_lea.vmem %s929_s20, 1024  ;;  %p931_p7 = scmp.lt.s32.totalorder %s1271_s16, %s929_s20 }
  0x61   : > { %439 = vmatprep.mubr.f32.mxu0 %v1016_v0  ;;  %p927_p13 = pneg %p926_p12  ;;  %p932_p10 = scmp.lt.s32.totalorder %s930_s27, %s924_s15 }
  0x62   : > { %751 = vmatmul.mubr.msk.f32.vlgmr.msra.gmra.mrb[0].mxu1 %vm362_vm0, %v482_v17  ;;  %359 = vperm.xlu0 %846, %v351_v18  }
  0x63   : > { %572 = vmatprep.mubr.f32.mxu1 %v1016_v0  ;;  %493 = vperm.xlu1 %847, %v485_v19   ;;  %p933_p9 = por %p932_p10, %p931_p7 }
  0x64   : > { %746 = vmatmul.mubr.msk.f32.gmra.mrb[2].mxu0 %vm362_vm0, %v349_v20 }
  0x65   : > { %p934_p11 = pnand %p933_p9, %p927_p13 }
  0x66   : > { %752 = vmatmul.mubr.msk.f32.gmra.mrb[2].mxu1 %vm362_vm0, %v483_v21 }
  0xdd   : > { %v355_v22 = vpop.permute.xlu0 %354 }
  0xde   : > { %v489_v56 = vpop.permute.xlu1 %488 }
  0xe1   : > { %v360_v30 = vpop.permute.xlu0 %359 }
  0xe2   : > { %v494_v60 = vpop.permute.xlu1 %493 }
 0x133   : > { %v435_v23 = vpop.f32.mrb[0].mxu0 }
 0x134   : > { %v436_v24 = vadd.f32 %v435_v23, %v355_v22  ;;  %v437_v25 = vpop.f32.mrb[1].mxu0 }
 0x135   : > { %v438_v26 = vadd.f32 %v437_v25, %v355_v22  ;;  %v568_v27 = vpop.f32.mrb[0].mxu1 }
 0x136   : > { %vm446_vm1 = vcmp.ge.f32.partialorder %v436_v24, 0.0  ;;  %v450_v28 = vmul.f32 0.2, %v436_v24  ;;  %v570_v29 = vpop.f32.mrb[1].mxu1  ;;  %v569_v57 = vadd.f32 %v568_v27, %v489_v56 }
 0x137   : > { %vm447_vm2 = vcmp.ge.f32.partialorder %v438_v26, 0.0  ;;  %v451_v31 = vmul.f32 0.2, %v438_v26  ;;  %v441_v32 = vpop.f32.mrb[2].mxu0  ;;  %v571_v58 = vadd.f32 %v570_v29, %v489_v56 }
 0x138   : > { %v454_v33 = vsel %vm446_vm1, %v436_v24, %v450_v28  ;;  %v442_v34 = vadd.f32 %v441_v32, %v360_v30  ;;  %v443_v35 = vpop.f32.mrb[3].mxu0 }
 0x139   : > { %v747_v36 = vmul.f32 -1.442695, %v454_v33  ;;  %v455_v37 = vsel %vm447_vm2, %v438_v26, %v451_v31  ;;  %v444_v38 = vadd.f32 %v443_v35, %v360_v30  ;;  %v574_v39 = vpop.f32.mrb[2].mxu1 }
 0x13a   : > { %v748_v40 = vmul.f32 -1.442695, %v455_v37  ;;  %vm448_vm3 = vcmp.ge.f32.partialorder %v442_v34, 0.0  ;;  %v452_v41 = vmul.f32 0.2, %v442_v34  ;;  %v576_v42 = vpop.f32.mrb[3].mxu1  ;;  %v575_v1 = vadd.f32 %v574_v39, %v494_v60 }
 0x13b   : > { %848 = vpow2.f32 %v747_v36  ;;  %vm449_vm4 = vcmp.ge.f32.partialorder %v444_v38, 0.0  ;;  %v453_v43 = vmul.f32 0.2, %v444_v38  ;;  %v577_v4 = vadd.f32 %v576_v42, %v494_v60 }
 0x13c   : > { %850 = vpow2.f32 %v748_v40  ;;  %v456_v44 = vsel %vm448_vm3, %v442_v34, %v452_v41 }
 0x13d   : > { %v749_v45 = vmul.f32 -1.442695, %v456_v44  ;;  %v457_v46 = vsel %vm449_vm4, %v444_v38, %v453_v43 }
 0x13e   : > { %v750_v47 = vmul.f32 -1.442695, %v457_v46 }
 0x13f   : > { %852 = vpow2.f32 %v749_v45 }
 0x140   : > { %854 = vpow2.f32 %v750_v47 }
 0x145   : > { %v849_v48 = vpop.eup %848 }
 0x146   : > { %v851_v49 = vpop.eup %850  ;;  %v470_v50 = vadd.f32 1.0, %v849_v48 }
 0x147   : > { %v471_v51 = vadd.f32 1.0, %v851_v49 }
 0x148   : > { %856 = vrcp.f32 %v470_v50 }
 0x149   : > { %v853_v52 = vpop.eup %852  ;;  %858 = vrcp.f32 %v471_v51 }
 0x14a   : > { %v855_v53 = vpop.eup %854  ;;  %v472_v54 = vadd.f32 1.0, %v853_v52 }
 0x14b   : > { %v473_v55 = vadd.f32 1.0, %v855_v53 }
 0x14c   : > { %860 = vrcp.f32 %v472_v54 }
 0x14d   : > { %862 = vrcp.f32 %v473_v55 }
 0x152   : > { %v857_v59 = vpop.eup %856 }
 0x153   : > { %v859_v61 = vpop.eup %858  ;;  %v579_v62 = vmul.f32 %v857_v59, %v569_v57 }
 0x154   : > { %v580_v63 = vmul.f32 %v859_v61, %v571_v58 }
 0x155   : > { %vm583_vm5 = vcmp.ge.f32.partialorder %v579_v62, 0.0  ;;  %v587_v0 = vmul.f32 0.2, %v579_v62 }
 0x156   : > { %v861_v2 = vpop.eup %860  ;;  %vm584_vm6 = vcmp.ge.f32.partialorder %v580_v63, 0.0  ;;  %v588_v3 = vmul.f32 0.2, %v580_v63 }
 0x157   : > { %v863_v5 = vpop.eup %862  ;;  %v591_v6 = vsel %vm583_vm5, %v579_v62, %v587_v0  ;;  %v581_v7 = vmul.f32 %v861_v2, %v575_v1 }
 0x158   : > { %595 = vst [vmem:[%s333_s8] sm:$0xff] %v591_v6  ;;  %v592_v8 = vsel %vm584_vm6, %v580_v63, %v588_v3  ;;  %v582_v9 = vmul.f32 %v863_v5, %v577_v4 }
 0x159   : > { %596 = vst [vmem:[%s333_s8 + $0x8] sm:$0xff] %v592_v8  ;;  %vm585_vm7 = vcmp.ge.f32.partialorder %v581_v7, 0.0  ;;  %v589_v10 = vmul.f32 0.2, %v581_v7 }
 0x15a   : > { %vm586_vm8 = vcmp.ge.f32.partialorder %v582_v9, 0.0  ;;  %v590_v11 = vmul.f32 0.2, %v582_v9 }
 0x15b   : > { %v593_v12 = vsel %vm585_vm7, %v581_v7, %v589_v10 }
 0x15c   : > { %597 = vst [vmem:[%s333_s8 + $0x10] sm:$0xff] %v593_v12  ;;  %v594_v13 = vsel %vm586_vm8, %v582_v9, %v590_v11 }
 0x15d   : > { %598 = vst [vmem:[%s333_s8 + $0x18] sm:$0xff] %v594_v13 }
 0x15e   : > { %937 = shalt.err (!%p934_p11)
}
 0x15f   : > { %s938_s19 = scalar_lea.hbm %s1276_s17, 512  ;;  %s942_s9 = scalar_lea.hbm %s1331_s6, 1024 }
 0x160   : > { %p939_p1 = scmp.ne.s32.totalorder %s1276_s17, %s938_s19  ;;  %p943_p5 = scmp.lt.u32.totalorder %s1276_s17, %s1331_s6 }
 0x161   : > { %p944_p4 = scmp.lt.u32.totalorder %s942_s9, %s938_s19  ;;  %p946_p0 = scmp.lt.u32.totalorder %s938_s19, %s1276_s17 }
 0x162   : > { %p940_p6 = pnand %p939_p1, %p1350_p3 }
 0x163   : > { %p945_p8 = por %p944_p4, %p943_p5 }
 0x164   : > { %p941_p2 = pneg %p940_p6 }
 0x165   : > { %p947_p12 = por %p946_p0, %p945_p8 }
 0x167   : > { %p948_p13 = pnand %p947_p12, %p941_p2 }
 0x169   : > { %951 = shalt.err (!%p948_p13)
}
 0x16a   : > { %s1019_s18 = smov 256   ;;  %s1020_s14 = smov 16  }
 0x16b   : > { %777 = dma.vmem_to_hbm [thread:$0]  (%p1350_p3), %s1271_s16, 512, %s1276_s17, %s600_s24, %s1019_s18, %s1019_s18, %s1020_s14  }
 0x16c PF: > { %s631_s0 = sand.u32 1, %s990_s21   ;;  %p1351_p7 = scmp.ne.s32.totalorder %s1342_s12, 0 }
 0x16d   : > { %p1352_p10 = scmp.ge.s32.totalorder %s1010_s26, 2  ;;  %s632_s15 = scalar_lea.sflag [#allocation4], %s631_s0 }
 0x16f   : > { %p787_p9 = pnand %p1352_p10, %p1351_p7 }
 0x171   : > { %985 = dma.done.wait (!%p787_p9), %s632_s15, 512  }
 0x172   : > { %987 = vsyncadd (!%p787_p9), %s632_s15, 4294966784  ;;  %s25_s26 = sadd.s32 1, %s1010_s26   ;;  %s1353_s10 = sld [smem:[#allocation11_spill]] }
 0x173   : > { %p22_p11 = scmp.ge.s32.totalorder %s25_s26, 4   ;;  %s1354_s21 = smov %s994_s22 }
 0x174   : > { %s1355_s22 = smov %s998_s23  ;;  %s1356_s23 = smov %s1112_s11 }
 0x175   : > { %s1357_s24 = smov %s1006_s25  ;;  %24 = sbr.rel (!%p22_p11) target bundleno = 10 (0xa), region = 102 }
 0x178   : > { %s1358_s25 = smov %s1353_s10 }
 0x17c   :  { %637 = vsyncpa [#allocation3], 1 }
 0x17d   :  { %639 = vsyncpa [#allocation3 + $0x1], 1 }
 0x17e   :  { %640 = vsyncpa [#allocation6], 1 }
 0x17f   :  { %642 = vsyncpa [#allocation6 + $0x1], 1 }
 0x180   :  { %643 = vsyncpa [#allocation4], 1 }
 0x181   :  { %645 = vsyncpa [#allocation4 + $0x1], 1 }

</bundles_post_ra>
